<compile_context>
chip_gen: v7x
topology: tpu7x:2x2x1
jax: 0.10.0
libtpu: 0.0.40
codegen_flags: <defaults>
</compile_context>

<pallas_src>
import functools

import jax
import jax.numpy as jnp
from jax import lax
from jax.experimental import pallas as pl
from jax.experimental.pallas import tpu as pltpu

EPS = 1e-8  # matches torch F.cosine_similarity default eps (per-norm clamp)


# --------------------------------------------------------------------------- #
# Kernels
# --------------------------------------------------------------------------- #
def _project_kernel(x_ref, w_ref, b_ref, hmap_ref, mm_ref, cos_ref, *,
                    scale, compute_dtype):
    # x_ref: (1, tn, C) compute dtype    w_ref: (C, C) compute dtype (pre-transposed)
    # b_ref: (1, C) f32                  hmap_ref: (C, H) f32 one-hot head membership
    # mm_ref / cos_ref: (1, tn, C) compute dtype
    p = jnp.dot(x_ref[0], w_ref[...], preferred_element_type=jnp.float32) + b_ref[...]
    # Per-head sum of squares via head-selector matmul: (tn, C) @ (C, H) -> (tn, H).
    ssq = lax.dot_general(p * p, hmap_ref[...], (((1,), (0,)), ((), ())),
                          preferred_element_type=jnp.float32)
    # rsqrt(max(ssq, eps^2)) == 1 / max(||.||_2, eps)  (torch per-norm clamp).
    inv = lax.rsqrt(jnp.maximum(ssq, EPS * EPS))                       # (tn, H)
    # Broadcast each head's scalar back over its channel block: (tn,H) @ (C,H)^T.
    inv_full = lax.dot_general(inv, hmap_ref[...], (((1,), (1,)), ((), ())),
                               preferred_element_type=jnp.float32)     # (tn, C)
    p_mm = p * scale                      # 1/num_heads folded here for the q side
    mm_ref[0] = p_mm.astype(compute_dtype)
    cos_ref[0] = (p_mm * inv_full).astype(compute_dtype)


def _score_kernel(qmm_ref, qcos_ref, kmm_ref, kcos_ref, cos_ref, mm_ref):
    # Contract the last dim of both operands (A @ B^T without an explicit .T).
    cdims = (((1,), (1,)), ((), ()))
    mm = lax.dot_general(qmm_ref[0], kmm_ref[0], cdims,
                         preferred_element_type=jnp.float32)
    cos = lax.dot_general(qcos_ref[0], kcos_ref[0], cdims,
                          preferred_element_type=jnp.float32)
    mm_ref[0] = mm.astype(mm_ref.dtype)
    cos_ref[0] = jnp.clip(cos, 0.0, 1.0).astype(cos_ref.dtype)


# --------------------------------------------------------------------------- #
# Wrapper helpers
# --------------------------------------------------------------------------- #
def _cdiv(a, b):
    return (a + b - 1) // b


def _rup(x, m):
    return _cdiv(x, m) * m


def _pick_tile(n, tmax, mult):
    """Balanced tile <= tmax (rounded to mult) minimizing padding of n."""
    tmax = max(mult, (tmax // mult) * mult)
    if n <= tmax:
        return _rup(n, mult)
    ntiles = _cdiv(n, tmax)
    return _rup(_cdiv(n, ntiles), mult)


def _vmem_limit(buffer_bytes):
    """VMEM cap computed from actual buffer sizes (1.5x margin, 32 MiB floor)."""
    return int(max(buffer_bytes * 3 // 2 + (4 << 20), 32 << 20))


def _default_tiles():
    """Bigger default tiles on 128 MiB VMEM parts (v5e/v6e) than v7x (64 MiB/TC)."""
    try:
        vmem = pltpu.get_tpu_info().vmem_capacity_bytes
    except Exception:
        vmem = 64 << 20
    if vmem >= (96 << 20):
        return 512, 1024      # v5e / v6e
    return 256, 512           # v7x (64 MiB per TensorCore)


def _project(x, wT, b2, hmap, *, scale, tn, cdt):
    """x: (B, Np, C) padded; returns (x_mm, x_cos), each (B, Np, C) in cdt."""
    B, Np, C = x.shape
    H = hmap.shape[1]
    nN = Np // tn
    kern = functools.partial(_project_kernel, scale=scale, compute_dtype=cdt)
    buf = (2 * tn * C * cdt.itemsize                                # x in (2 bufs)
           + 2 * (C * C * cdt.itemsize + C * 4 + C * H * 4)         # constants (2 bufs)
           + 2 * 2 * tn * C * cdt.itemsize)                         # two outputs (2 bufs)
    return pl.pallas_call(
        kern,
        out_shape=(jax.ShapeDtypeStruct((B, Np, C), cdt),
                   jax.ShapeDtypeStruct((B, Np, C), cdt)),
        grid_spec=pltpu.PrefetchScalarGridSpec(
            num_scalar_prefetch=0,
            grid=(B, nN),
            in_specs=[
                pl.BlockSpec((1, tn, C), lambda b, i: (b, i, 0)),
                pl.BlockSpec((C, C), lambda b, i: (0, 0)),
                pl.BlockSpec((1, C), lambda b, i: (0, 0)),
                pl.BlockSpec((C, H), lambda b, i: (0, 0)),
            ],
            out_specs=[
                pl.BlockSpec((1, tn, C), lambda b, i: (b, i, 0)),
                pl.BlockSpec((1, tn, C), lambda b, i: (b, i, 0)),
            ],
        ),
        compiler_params=pltpu.CompilerParams(
            dimension_semantics=("parallel", "parallel"),
            vmem_limit_bytes=_vmem_limit(buf)),
    )(x, wT, b2, hmap)


# --------------------------------------------------------------------------- #
# Public entry point
# --------------------------------------------------------------------------- #
def weight_attention(query, key, weight, bias, *, num_heads,
                     compute_dtype=jnp.bfloat16,
                     out_dtype=jnp.float32,
                     tq_max=None, tk_max=None):
    """query: [B, Qn, C], key: [B, Kn, C], weight: [C, C] (torch out x in), bias: [C].
    Returns (weight_cos, weight_mm), each [B, Qn, Kn] in out_dtype.

    compute_dtype: MXU operand dtype (bf16 default — MXU-native on v5e/v6e/v7x;
    accumulation and norm/eps/clip math stay in float32).  Use jnp.float32 for a
    precision-sensitive consumer.  out_dtype=jnp.bfloat16 halves the dominant
    HBM writeback of the two (B, Qn, Kn) score maps."""
    B, Qn, C = query.shape
    KB, Kn, KC = key.shape
    assert KB == B and KC == C and C % num_heads == 0

    odt = jnp.dtype(out_dtype)
    if Qn == 0 or Kn == 0:
        empty = jnp.empty((B, Qn, Kn), odt)
        return empty, empty

    cdt = jnp.dtype(compute_dtype)
    d_tq, d_tk = _default_tiles()
    tq_max = d_tq if tq_max is None else tq_max
    tk_max = d_tk if tk_max is None else tk_max

    # Q tile: sublane multiple of the compute dtype (8 f32 / 16 bf16 / 32 int8);
    # K tile: multiple of 128 lanes (lane-dense, unmasked output stores).
    q_mult = max(8, 32 // cdt.itemsize)
    tq = _pick_tile(Qn, tq_max, q_mult)
    tk = _pick_tile(Kn, tk_max, 128)
    Qp, Kp = _rup(Qn, tq), _rup(Kn, tk)
    nQ, nK = Qp // tq, Kp // tk

    q = jnp.asarray(query, cdt)
    k = jnp.asarray(key, cdt)
    if Qp != Qn:
        q = jnp.pad(q, ((0, 0), (0, Qp - Qn), (0, 0)))
    if Kp != Kn:
        k = jnp.pad(k, ((0, 0), (0, Kp - Kn), (0, 0)))

    wT = jnp.asarray(weight, jnp.float32).T.astype(cdt)   # x @ wT == nn.Linear(x)
    b2 = jnp.asarray(bias, jnp.float32).reshape(1, C)
    Dh = C // num_heads
    # One-hot head membership (C, H): hmap[c, h] = 1 iff channel c belongs to head h.
    hmap = (jnp.arange(C)[:, None] // Dh ==
            jnp.arange(num_heads)[None, :]).astype(jnp.float32)

    # ---- Pass 1: projection + per-head inverse norms (1/num_heads folded into q). ----
    q_mm, q_cos = _project(q, wT, b2, hmap, scale=1.0 / num_heads, tn=tq, cdt=cdt)
    k_mm, k_cos = _project(k, wT, b2, hmap, scale=1.0, tn=tk, cdt=cdt)

    # ---- Pass 2: pure two-matmul streaming kernel, all grid axes parallel. ----
    buf = (2 * 2 * tq * C * cdt.itemsize       # q_mm, q_cos blocks (double-buffered)
           + 2 * 2 * tk * C * cdt.itemsize     # k_mm, k_cos blocks
           + 2 * 2 * tq * tk * odt.itemsize)   # two output tiles
    cos, mm = pl.pallas_call(
        _score_kernel,
        out_shape=(jax.ShapeDtypeStruct((B, Qp, Kp), odt),
                   jax.ShapeDtypeStruct((B, Qp, Kp), odt)),
        grid_spec=pltpu.PrefetchScalarGridSpec(
            num_scalar_prefetch=0,
            grid=(B, nQ, nK),
            in_specs=[
                pl.BlockSpec((1, tq, C), lambda b, i, j: (b, i, 0)),
                pl.BlockSpec((1, tq, C), lambda b, i, j: (b, i, 0)),
                pl.BlockSpec((1, tk, C), lambda b, i, j: (b, j, 0)),
                pl.BlockSpec((1, tk, C), lambda b, i, j: (b, j, 0)),
            ],
            out_specs=[
                pl.BlockSpec((1, tq, tk), lambda b, i, j: (b, i, j)),
                pl.BlockSpec((1, tq, tk), lambda b, i, j: (b, i, j)),
            ],
        ),
        compiler_params=pltpu.CompilerParams(
            dimension_semantics=("parallel", "parallel", "parallel"),
            vmem_limit_bytes=_vmem_limit(buf)),
    )(q_mm, q_cos, k_mm, k_cos)

    if Qp != Qn or Kp != Kn:
        cos = cos[:, :Qn, :Kn]
        mm = mm[:, :Qn, :Kn]
    return cos, mm


# --------------------------------------------------------------------------- #
# Pure-JAX reference + tests
# --------------------------------------------------------------------------- #
def _reference(query, key, weight, bias, *, num_heads):
    """Pure-JAX reference mirroring the PyTorch forward (mask=None, dropout=0)."""
    B, Qn, C = query.shape
    Kn = key.shape[1]
    Dh = C // num_heads
    q = (query @ weight.T + bias).reshape(B, Qn, num_heads, Dh).transpose(0, 2, 1, 3)
    k = (key @ weight.T + bias).reshape(B, Kn, num_heads, Dh).transpose(0, 2, 1, 3)
    mm = jnp.einsum("bhqd,bhkd->bhqk", q, k)
    qn = jnp.maximum(jnp.linalg.norm(q, axis=-1), EPS)   # (B,H,Qn)
    kn = jnp.maximum(jnp.linalg.norm(k, axis=-1), EPS)   # (B,H,Kn)
    cos = mm / (qn[..., :, None] * kn[..., None, :])
    cos = jnp.clip(cos.sum(axis=1) / num_heads, 0.0, 1.0)
    mm = mm.sum(axis=1) / num_heads
    return cos, mm


if __name__ == "__main__":
    root = jax.random.PRNGKey(0)

    def make_inputs(seed_key, B, Qn, Kn, C, zero_bias=True):
        kq, kk, kw, kb = jax.random.split(seed_key, 4)
        query = jax.random.normal(kq, (B, Qn, C), jnp.float32)
        key_t = jax.random.normal(kk, (B, Kn, C), jnp.float32)
        bound = (6.0 / (C + C)) ** 0.5          # xavier_uniform_ for square weight
        weight = jax.random.uniform(kw, (C, C), jnp.float32, -bound, bound)
        if zero_bias:
            bias = jnp.zeros((C,), jnp.float32)  # nn.init.constant_(bias, 0.0)
        else:
            bias = 0.1 * jax.random.normal(kb, (C,), jnp.float32)
        return query, key_t, weight, bias

    def check(name, got, want, atol, rtol):
        for g, w, what in zip(got, want, ("cos", "mm")):
            g = jnp.asarray(g, jnp.float32)
            assert g.shape == w.shape, f"{name}:{what} shape {g.shape} vs {w.shape}"
            assert jnp.allclose(g, w, atol=atol, rtol=rtol), f"{name}:{what} mismatch"

    k1, k2 = jax.random.split(root)

    # Config 1: tiny (original module test size), f32 compute, single tile per batch.
    q1, kk1, w1, b1 = make_inputs(k1, B=2, Qn=8, Kn=8, C=32, zero_bias=True)
    ref1 = _reference(q1, kk1, w1, b1, num_heads=8)
    out1 = weight_attention(q1, kk1, w1, b1, num_heads=8, compute_dtype=jnp.float32)
    jax.block_until_ready(out1)
    check("f32-small", out1, ref1, 1e-4, 1e-4)

    # Config 2: default bf16 MXU operands (f32 accumulation / norms / clip).
    out2 = weight_attention(q1, kk1, w1, b1, num_heads=8)
    jax.block_until_ready(out2)
    check("bf16-small", out2, ref1, 1e-1, 5e-2)

    # Config 3: multi-tile grid with Q/K padding and balanced tiles, f32 compute.
    q3, kk3, w3, b3 = make_inputs(k2, B=2, Qn=40, Kn=200, C=64, zero_bias=False)
    ref3 = _reference(q3, kk3, w3, b3, num_heads=8)
    out3 = weight_attention(q3, kk3, w3, b3, num_heads=8, compute_dtype=jnp.float32,
                            tq_max=16, tk_max=128)
    jax.block_until_ready(out3)
    check("f32-tiled", out3, ref3, 1e-4, 1e-4)

    # Config 4: default bf16 compute with bf16 outputs (halved HBM writeback).
    out4 = weight_attention(q3, kk3, w3, b3, num_heads=8, tq_max=16, tk_max=128,
                            out_dtype=jnp.bfloat16)
    jax.block_until_ready(out4)
    assert out4[0].dtype == jnp.bfloat16 and out4[1].dtype == jnp.bfloat16
    check("bf16-out-tiled", out4, ref3, 1.5e-1, 1e-1)

    print("KERNEL_OK")
</pallas_src>

<mosaic_0001>
module attributes {stable_mosaic.version = 11 : i64} {
  func.func @_project_kernel(%arg0: i32, %arg1: i32, %arg2: memref<1x8x32xf32, #tpu.memory_space<vmem>>, %arg3: memref<32x32xf32, #tpu.memory_space<vmem>>, %arg4: memref<1x32xf32, #tpu.memory_space<vmem>>, %arg5: memref<32x8xf32, #tpu.memory_space<vmem>>, %arg6: memref<1x8x32xf32, #tpu.memory_space<vmem>>, %arg7: memref<1x8x32xf32, #tpu.memory_space<vmem>>) attributes {dimension_semantics = [#tpu.dimension_semantics<parallel>, #tpu.dimension_semantics<parallel>], iteration_bounds = array<i64: 2, 1>, scalar_prefetch = 0 : i64, scratch_operands = 0 : i64, tpu.core_type = #tpu.core_type<tc>, window_params = [{transform_indices = @transform_0, window_bounds = array<i64: 1, 8, 32>}, {pipeline_mode = #tpu.pipeline_mode<synchronous>, transform_indices = @transform_1, window_bounds = array<i64: 32, 32>}, {pipeline_mode = #tpu.pipeline_mode<synchronous>, transform_indices = @transform_2, window_bounds = array<i64: 1, 32>}, {pipeline_mode = #tpu.pipeline_mode<synchronous>, transform_indices = @transform_3, window_bounds = array<i64: 32, 8>}, {transform_indices = @transform_4, window_bounds = array<i64: 1, 8, 32>}, {transform_indices = @transform_5, window_bounds = array<i64: 1, 8, 32>}]} {
    %c0 = arith.constant 0 : index
    %c0_0 = arith.constant 0 : index
    %c0_1 = arith.constant 0 : index
    %0 = vector.load %arg2[%c0, %c0_0, %c0_1] : memref<1x8x32xf32, #tpu.memory_space<vmem>>, vector<1x8x32xf32>
    %1 = vector.shape_cast %0 : vector<1x8x32xf32> to vector<8x32xf32>
    %c0_2 = arith.constant 0 : index
    %c0_3 = arith.constant 0 : index
    %2 = vector.load %arg3[%c0_2, %c0_3] : memref<32x32xf32, #tpu.memory_space<vmem>>, vector<32x32xf32>
    %cst = arith.constant dense<0.000000e+00> : vector<8x32xf32>
    %3 = tpu.matmul %1, %2, %cst {dimension_numbers = #tpu.dot_dimension_numbers<[1], [0], [0], [1], [0, 0, 1, 1], [], []>} : vector<8x32xf32>, vector<32x32xf32>, vector<8x32xf32> -> vector<8x32xf32>
    %c0_4 = arith.constant 0 : index
    %c0_5 = arith.constant 0 : index
    %4 = vector.load %arg4[%c0_4, %c0_5] : memref<1x32xf32, #tpu.memory_space<vmem>>, vector<1x32xf32>
    %5 = vector.broadcast %4 : vector<1x32xf32> to vector<8x32xf32>
    %6 = arith.addf %3, %5 : vector<8x32xf32>
    %7 = arith.mulf %6, %6 : vector<8x32xf32>
    %c0_6 = arith.constant 0 : index
    %c0_7 = arith.constant 0 : index
    %8 = vector.load %arg5[%c0_6, %c0_7] : memref<32x8xf32, #tpu.memory_space<vmem>>, vector<32x8xf32>
    %cst_8 = arith.constant dense<0.000000e+00> : vector<8x8xf32>
    %9 = tpu.matmul %7, %8, %cst_8 {dimension_numbers = #tpu.dot_dimension_numbers<[1], [0], [0], [1], [0, 0, 1, 1], [], []>} : vector<8x32xf32>, vector<32x8xf32>, vector<8x8xf32> -> vector<8x8xf32>
    %cst_9 = arith.constant 1.000000e-16 : f32
    %10 = vector.broadcast %cst_9 : f32 to vector<8x8xf32>
    %11 = arith.maximumf %9, %10 : vector<8x8xf32>
    %12 = math.rsqrt %11 : vector<8x8xf32>
    %c0_10 = arith.constant 0 : index
    %c0_11 = arith.constant 0 : index
    %13 = vector.load %arg5[%c0_10, %c0_11] : memref<32x8xf32, #tpu.memory_space<vmem>>, vector<32x8xf32>
    %cst_12 = arith.constant dense<0.000000e+00> : vector<8x32xf32>
    %14 = tpu.matmul %12, %13, %cst_12 {dimension_numbers = #tpu.dot_dimension_numbers<[1], [1], [0], [0], [0, 0, 1, 0], [], []>} : vector<8x8xf32>, vector<32x8xf32>, vector<8x32xf32> -> vector<8x32xf32>
    %cst_13 = arith.constant 1.250000e-01 : f32
    %15 = vector.broadcast %cst_13 : f32 to vector<8x32xf32>
    %16 = arith.mulf %6, %15 : vector<8x32xf32>
    %c0_14 = arith.constant 0 : index
    %c0_15 = arith.constant 0 : index
    %c0_16 = arith.constant 0 : index
    %17 = vector.load %arg6[%c0_14, %c0_15, %c0_16] : memref<1x8x32xf32, #tpu.memory_space<vmem>>, vector<1x8x32xf32>
    %18 = vector.shape_cast %17 : vector<1x8x32xf32> to vector<8x32xf32>
    %19 = vector.shape_cast %16 : vector<8x32xf32> to vector<1x8x32xf32>
    tpu.vector_store %arg6[%c0_14, %c0_15, %c0_16], %19 {strides = array<i32>} : memref<1x8x32xf32, #tpu.memory_space<vmem>>, vector<1x8x32xf32>,
    %20 = arith.mulf %16, %14 : vector<8x32xf32>
    %c0_17 = arith.constant 0 : index
    %c0_18 = arith.constant 0 : index
    %c0_19 = arith.constant 0 : index
    %21 = vector.load %arg7[%c0_17, %c0_18, %c0_19] : memref<1x8x32xf32, #tpu.memory_space<vmem>>, vector<1x8x32xf32>
    %22 = vector.shape_cast %21 : vector<1x8x32xf32> to vector<8x32xf32>
    %23 = vector.shape_cast %20 : vector<8x32xf32> to vector<1x8x32xf32>
    tpu.vector_store %arg7[%c0_17, %c0_18, %c0_19], %23 {strides = array<i32>} : memref<1x8x32xf32, #tpu.memory_space<vmem>>, vector<1x8x32xf32>,
    return
  }
  func.func @transform_0(%arg0: i32, %arg1: i32) -> (i32, i32, i32) {
    %c0_i32 = arith.constant 0 : i32
    %c0_i32_0 = arith.constant 0 : i32
    return %arg0, %arg1, %c0_i32 : i32, i32, i32
  }
  func.func @transform_1(%arg0: i32, %arg1: i32) -> (i32, i32) {
    %c0_i32 = arith.constant 0 : i32
    %c0_i32_0 = arith.constant 0 : i32
    %c0_i32_1 = arith.constant 0 : i32
    return %c0_i32, %c0_i32_0 : i32, i32
  }
  func.func @transform_2(%arg0: i32, %arg1: i32) -> (i32, i32) {
    %c0_i32 = arith.constant 0 : i32
    %c0_i32_0 = arith.constant 0 : i32
    %c0_i32_1 = arith.constant 0 : i32
    return %c0_i32, %c0_i32_0 : i32, i32
  }
  func.func @transform_3(%arg0: i32, %arg1: i32) -> (i32, i32) {
    %c0_i32 = arith.constant 0 : i32
    %c0_i32_0 = arith.constant 0 : i32
    %c0_i32_1 = arith.constant 0 : i32
    return %c0_i32, %c0_i32_0 : i32, i32
  }
  func.func @transform_4(%arg0: i32, %arg1: i32) -> (i32, i32, i32) {
    %c0_i32 = arith.constant 0 : i32
    %c0_i32_0 = arith.constant 0 : i32
    return %arg0, %arg1, %c0_i32 : i32, i32, i32
  }
  func.func @transform_5(%arg0: i32, %arg1: i32) -> (i32, i32, i32) {
    %c0_i32 = arith.constant 0 : i32
    %c0_i32_0 = arith.constant 0 : i32
    return %arg0, %arg1, %c0_i32 : i32, i32, i32
  }
}

</mosaic_0001>

<bundles_post_ra>
// kernel: tpu_custom_call.1
= control target key start
LH: loop header
LB: loop body
LE: loop exit
PB: predicated region body
PF: predicated region fallthrough
CT: control target
= control target key end

     0   :  { %11 = vsyncpa [#allocation3], 0  ;;  %s1260_s0 = inlined_call_operand.hbm [shape: f32[2,8,32], index: 0, kind: input, shape index: {}]   ;;  %s1261_s1 = inlined_call_operand.vmem [shape: f32[32,32], index: 1, kind: input, shape index: {}]   ;;  %s1262_s2 = inlined_call_operand.vmem [shape: f32[1,32], index: 2, kind: input, shape index: {}]   ;;  %s1263_s3 = inlined_call_operand.vmem [shape: f32[32,8], index: 3, kind: input, shape index: {}]   ;;  %s1264_s4 = inlined_call_operand.hbm [shape: f32[2,8,32], index: 4, kind: output, shape index: {0}]   ;;  %s1265_s5 = inlined_call_operand.hbm [shape: f32[2,8,32], index: 5, kind: output, shape index: {1}]  }
   0x1   :  { %13 = vsyncpa [#allocation3 + $0x1], 0 }
   0x2   :  { %14 = vsyncpa [#allocation4], 0 }
   0x3   :  { %16 = vsyncpa [#allocation4 + $0x1], 0 }
   0x4   :  { %17 = vsyncpa [#allocation7], 0 }
   0x5   :  { %19 = vsyncpa [#allocation7 + $0x1], 0  ;;  %s1019_s18 = smov 0   ;;  %s1021_s19 = smov 0  }
   0x6   :  { %s1023_s20 = smov 0   ;;  %s1025_s21 = smov 0  }
   0x7   :  { %s1027_s22 = smov 0   ;;  %s1029_s23 = smov 0  }
   0x8 LB: > { %s673_s24 = sadd.s32 4294967295, %s981_s23   ;;  %s674_s25 = sadd.s32 4294967294, %s981_s23   ;;  %s981_s23 = sphi %s1029_s23, %s25_s23   ;;  %s977_s22 = sphi %s1027_s22, %s1281_s22   ;;  %s973_s21 = sphi %s1025_s21, %s1280_s21   ;;  %s969_s20 = sphi %s1023_s20, %s1279_s20   ;;  %s965_s19 = sphi %s1021_s19, %s1278_s19   ;;  %s961_s18 = sphi %s1019_s18, %s1277_s18  }
   0x9   : > { %s37_s26 = sadd.s32 1, %s977_s22  ;;  %s46_s27 = sadd.s32 1, %s969_s20 }
   0xa   : > { %p39_p0 = scmp.ge.s32.totalorder %s37_s26, 2  ;;  %p53_p1 = scmp.ne.s32.totalorder %s969_s20, %s965_s19 }
   0xb   : > { %p54_p2 = scmp.eq.s32.totalorder %s981_s23, 0  ;;  %p59_p3 = scmp.ne.s32.totalorder %s965_s19, %s961_s18 }
   0xc   : > { %s1283_s26 = smov (%p39_p0, %s37_s26), 0  ;;  %p60_p5 = scmp.eq.s32.totalorder %s673_s24, 0 }
   0xd   : > { %p1060_p4 = por %p54_p2, %p53_p1  ;;  %s41_s29 = ssub.s32 %s977_s22, %s1283_s26 }
   0xe   : > { %p148_p6 = scmp.eq.s32.totalorder %s673_s24, 1  ;;  %p44_p7 = scmp.eq.s32.totalorder %s41_s29, 0 }
   0xf   : > { %p1066_p8 = por %p60_p5, %p59_p3  ;;  %p154_p10 = scmp.eq.s32.totalorder %s674_s25, 1 }
  0x10   : > { %p1070_p9 = por %p148_p6, %p53_p1  ;;  %p782_p13 = scmp.lt.s32.totalorder %s981_s23, 2 }
  0x11   : > { %s1075_s7 = scalar_select %p44_p7, %s969_s20, %s46_s27  }
  0x12   : > { %s1269_s6 = scalar_select %p1070_p9, 1, 0 }
  0x13   : > { %p1077_p11 = por %p154_p10, %p59_p3  ;;  %s211_s9 = sand.u32 1, %s969_s20  }
  0x14   : > { %s677_s10 = sshll.u32 %s211_s9, 3  ;;  %s678_s11 = sshll.u32 %s977_s22, 7 }
  0x15   : > { %s1270_s8 = scalar_select %p1077_p11, 1, 0 }
  0x16   : > { %s1088_s14 = scalar_lea.hbm %s1260_s0, %s678_s11  ;;  %s215_s15 = scalar_lea.vmem [#allocation2], %s677_s10 }
  0x17   : > { %s223_s16 = sshll.u32 %s215_s15, 4  ;;  %p1094_p0 = pnand %p782_p13, %p1060_p4  ;;  %s1090_s16 = int_to_ptr.vmem [resolvable:$true] %s223_s16 }
  0x18   : > { %s212_s24 = scalar_lea.sflag [#allocation3], %s211_s9  ;;  %s837_s25 = scalar_lea.hbm %s1088_s14, 128 }
  0x19   : > { %p838_p3 = scmp.ne.s32.totalorder %s1088_s14, %s837_s25  ;;  %p839_p5 = pneg %p1094_p0 }
  0x1a   : > { %s842_s28 = scalar_lea.hbm %s1260_s0, 256  ;;  %p843_p4 = scmp.lt.u32.totalorder %s1088_s14, %s1260_s0 }
  0x1b   : > { %p840_p6 = pnand %p839_p5, %p838_p3  ;;  %p844_p10 = scmp.lt.u32.totalorder %s842_s28, %s837_s25 }
  0x1c   : > { %p846_p12 = scmp.lt.u32.totalorder %s837_s25, %s1088_s14 }
  0x1d   : > { %p841_p7 = pneg %p840_p6  ;;  %p845_p13 = por %p844_p10, %p843_p4 }
  0x1f   : > { %p847_p1 = por %p846_p12, %p845_p13 }
  0x21   : > { %p848_p2 = pnand %p847_p1, %p841_p7 }
  0x23   : > { %851 = shalt.err (!%p848_p2)
}
  0x24   : > { %s852_s9 = scalar_lea.vmem %s1090_s16, 128  ;;  %s983_s12 = smov [#allocation2]  }
  0x25   : > { %p853_p3 = scmp.ne.s32.totalorder %s1090_s16, %s852_s9  ;;  %s857_s13 = sshll.u32 %s983_s12, 4  ;;  %s858_s13 = int_to_ptr.vmem [resolvable:$false] %s857_s13 }
  0x26   : > { %s859_s15 = scalar_lea.vmem %s858_s13, 256  ;;  %p860_p9 = scmp.lt.s32.totalorder %s1090_s16, %s858_s13 }
  0x27   : > { %p855_p6 = pnand %p853_p3, %p839_p5  ;;  %p861_p4 = scmp.lt.s32.totalorder %s859_s15, %s852_s9 }
  0x29   : > { %p856_p11 = pneg %p855_p6  ;;  %p862_p10 = por %p861_p4, %p860_p9 }
  0x2b   : > { %p863_p12 = pnand %p862_p10, %p856_p11 }
  0x2d   : > { %866 = shalt.err (!%p863_p12)
}
  0x2e   : > { %774 = dma.hbm_to_vmem [thread:$0]  (!%p1094_p0), %s1088_s14, 128, %s1090_s16, %s212_s24  }
  0x2f   : > { %p1272_p1 = scmp.lt.s32.totalorder %s981_s23, 3  ;;  %p1273_p2 = scmp.ge.s32.totalorder %s981_s23, 1 }
  0x31   : > { %p229_p5 = pnand %p1273_p2, %p1272_p1 }
  0x32   : > { %s1130_s25 = sand.u32 (!%p229_p5), 1, %s965_s19  }
  0x33   : > { %232 = sbr.rel (%p229_p5) target bundleno = 738 (0x2e2), region = 36  ;;  %s1133_s27 = sshll.u32 (!%p229_p5), %s1130_s25, 3 }
  0x34   : > { %s235_s29 = scalar_lea.sflag (!%p229_p5), [#allocation3], %s1130_s25  ;;  %s238_s17 = scalar_lea.vmem (!%p229_p5), [#allocation2], %s1133_s27 }
  0x3a   : > { %948 = dma.done.wait (%p1066_p8), %s235_s29, 128  }
  0x3b   : > { %950 = vsyncadd (%p1066_p8), %s235_s29, 4294967168  ;;  %v984_v0 = vmov 0.0|0.0   ;;  %vm985_vm0 = vmmov 0   ;;  %v986_v1 = vmov 0.0   ;;  %v271_v2 = vld [vmem:[%s1261_s1] sm:$0xff]  ;;  %v272_v3 = vld [vmem:[%s1261_s1 + $0x8] sm:$0xff] }
  0x3c   : > { %745 = vmatprep.subr.bf16.mxu1 %v984_v0  ;;  %720 = vmatprep.mubr.msk.f32.mxu1 %vm985_vm0, %v986_v1  ;;  %v273_v4 = vld [vmem:[%s1261_s1 + $0x10] sm:$0xff]  ;;  %v746_v5 = vpack.c.bf16 %v272_v3, %v271_v2  ;;  %v274_v6 = vld [vmem:[%s1261_s1 + $0x18] sm:$0xff]  ;;  %v357_v8 = vld [vmem:[%s1263_s3] sm:$0xff]  ;;  %vm282_vm1 = vcmask 261120   ;;  %vm436_vm2 = vcmask 64512   ;;  %s262_s30 = scalar_lea.vmem [#allocation5], %s1133_s27 }
  0x3d   : > { %757 = vmatprep.subr.bf16.mxu0 %v984_v0  ;;  %742 = vmatprep.mubr.msk.f32.mxu0 %vm985_vm0, %v986_v1  ;;  %v749_v7 = vpack.c.bf16 %v274_v6, %v273_v4  ;;  %v358_v9 = vld [vmem:[%s1263_s3 + $0x8] sm:$0xff]  ;;  %v359_v12 = vld [vmem:[%s1263_s3 + $0x10] sm:$0xff]  ;;  %v360_v13 = vld [vmem:[%s1263_s3 + $0x18] sm:$0xff]  ;;  %s693_s11 = sshll.u32 %s973_s21, 7  ;;  %s546_s15 = sshll.u32 %s262_s30, 4  ;;  %s547_s15 = int_to_ptr.vmem [resolvable:$true] %s546_s15 }
  0x3e   : > { %747 = vmatpush3.bf16.msra.mxu1 %v746_v5  ;;  %v270_v10 = vld [vmem:[%s238_s17] sm:$0xff]  ;;  %v752_v11 = vpack.c.bf16 %v358_v9, %v357_v8  ;;  %v755_v14 = vpack.c.bf16 %v360_v13, %v359_v12  ;;  %vm759_vm3 = vmpackc.low %vm436_vm2, %vm436_vm2  ;;  %s1184_s13 = scalar_lea.hbm %s1264_s4, %s693_s11  ;;  %s527_s29 = scalar_lea.sflag [#allocation4], %s1130_s25 }
  0x3f   : > { %748 = vmatprep.subr.bf16.mxu1 %v984_v0  ;;  %v683_v15 = vld [vmem:[%s1262_s2] ss:$0 sm:$0xff]  ;;  %s867_s14 = scalar_lea.vmem %s547_s15, 128  ;;  %p1274_p9 = scmp.ne.s32.totalorder %s1269_s6, 0 }
  0x40   : > { %760 = vmatpush3.bf16.xpose.msk.msra.mxu0 %vm759_vm3, %v752_v11  ;;  %p868_p8 = scmp.ne.s32.totalorder %s547_s15, %s867_s14  ;;  %s987_s16 = smov [#allocation5]  }
  0x41   : > { %761 = vmatprep.subr.bf16.mxu0 %v984_v0  ;;  %s871_s24 = sshll.u32 %s987_s16, 4  ;;  %s872_s24 = int_to_ptr.vmem [resolvable:$false] %s871_s24 }
  0x42   : > { %750 = vmatpush3.bf16.msra.mxu1 %v749_v7  ;;  %p869_p11 = pnand %p868_p8, %p1274_p9  ;;  %s873_s28 = scalar_lea.vmem %s872_s24, 256 }
  0x43   : > { %751 = vmatprep.subr.bf16.mxu1 %v984_v0  ;;  %p874_p7 = scmp.lt.s32.totalorder %s547_s15, %s872_s24  ;;  %p875_p13 = scmp.lt.s32.totalorder %s873_s28, %s867_s14 }
  0x44   : > { %p870_p0 = pneg %p869_p11 }
  0x45   : > { %721 = vmatmul.mubr.msk.f32.vlgmr.msra.gmra.mrb[0].mxu1 %vm282_vm1, %v270_v10  ;;  %p876_p3 = por %p875_p13, %p874_p7 }
  0x46   : > { %753 = vmatpush3.bf16.msra.mxu1 %v752_v11  ;;  %731 = vmatprep.mubr.msk.f32.mxu1 %vm985_vm0, %v986_v1 }
  0x47   : > { %754 = vmatprep.subr.bf16.mxu1 %v984_v0  ;;  %p877_p6 = pnand %p876_p3, %p870_p0 }
  0x48   : > { %764 = vmatpush3.bf16.xpose.msk.msra.mxu0 %vm759_vm3, %v755_v14 }
  0x4a   : > { %756 = vmatpush3.bf16.msra.mxu1 %v755_v14 }
 0x118   : > { %v352_v16 = vpop.f32.mrb[0].mxu1 }
 0x119   : > { %v353_v17 = vadd.f32 %v683_v15, %v352_v16  ;;  %v722_v18 = vpop.f32.mrb[1].mxu1 }
 0x11b   : > { %v356_v19 = vmul.f32 %v353_v17, %v353_v17  ;;  %v522_v20 = vmul.f32 0.125, %v353_v17 }
 0x11d   : > { %732 = vmatmul.mubr.msk.f32.vlgmr.msra.gmra.mrb[2].mxu1 %vm282_vm1, %v356_v19  ;;  %523 = vst.msk [vmem:[%s262_s30] sm:$0xff] %vm282_vm1, %v522_v20 }
 0x1f0   : > { %v430_v21 = vpop.f32.mrb[2].mxu1 }
 0x1f1   : > { %v434_v22 = vmax.f32 %v430_v21, 1e-16  ;;  %v733_v23 = vpop.f32.mrb[3].mxu1 }
 0x1f3   : > { %835 = vrsqrt.f32 %v434_v22 }
 0x1fd   : > { %v836_v24 = vpop.eup %835 }
 0x1fe   : > { %743 = vmatmul.mubr.msk.f32.vlgmr.msra.gmra.mrb[0].mxu0 %vm436_vm2, %v836_v24 }
 0x1ff   : > { %880 = shalt.err (!%p877_p6)
}
 0x200   : > { %s881_s17 = scalar_lea.hbm %s1184_s13, 128  ;;  %s885_s9 = scalar_lea.hbm %s1264_s4, 256 }
 0x201   : > { %p882_p4 = scmp.ne.s32.totalorder %s1184_s13, %s881_s17  ;;  %p886_p1 = scmp.lt.u32.totalorder %s1184_s13, %s1264_s4 }
 0x202   : > { %p887_p2 = scmp.lt.u32.totalorder %s885_s9, %s881_s17  ;;  %p889_p8 = scmp.lt.u32.totalorder %s881_s17, %s1184_s13 }
 0x203   : > { %p883_p10 = pnand %p882_p4, %p1274_p9 }
 0x204   : > { %p888_p5 = por %p887_p2, %p886_p1 }
 0x205   : > { %p884_p12 = pneg %p883_p10 }
 0x206   : > { %p890_p11 = por %p889_p8, %p888_p5 }
 0x208   : > { %p891_p0 = pnand %p890_p11, %p884_p12 }
 0x20a   : > { %894 = shalt.err (!%p891_p0)
}
 0x20b   : > { %767 = dma.vmem_to_hbm [thread:$0]  (%p1274_p9), %s547_s15, 128, %s1184_s13, %s527_s29  }
 0x20c   : > { %s269_s14 = scalar_lea.vmem [#allocation6], %s1133_s27  ;;  %s1210_s17 = scalar_lea.hbm %s1265_s5, %s693_s11 }
 0x20d   : > { %s560_s24 = sshll.u32 %s269_s14, 4  ;;  %s532_s30 = scalar_lea.sflag [#allocation7], %s1130_s25  ;;  %s1212_s24 = int_to_ptr.vmem [resolvable:$true] %s560_s24 }
 0x20e   : > { %s895_s13 = scalar_lea.vmem %s1212_s24, 128  ;;  %s988_s27 = smov [#allocation6]  }
 0x20f   : > { %p896_p7 = scmp.ne.s32.totalorder %s1212_s24, %s895_s13  ;;  %s899_s21 = sshll.u32 %s988_s27, 4  ;;  %s900_s21 = int_to_ptr.vmem [resolvable:$false] %s899_s21 }
 0x210   : > { %s901_s15 = scalar_lea.vmem %s900_s21, 256  ;;  %p902_p6 = scmp.lt.s32.totalorder %s1212_s24, %s900_s21 }
 0x211   : > { %p897_p13 = pnand %p896_p7, %p1274_p9  ;;  %p903_p4 = scmp.lt.s32.totalorder %s901_s15, %s895_s13 }
 0x213   : > { %p898_p3 = pneg %p897_p13  ;;  %p904_p10 = por %p903_p4, %p902_p6 }
 0x215   : > { %p905_p12 = pnand %p904_p10, %p898_p3 }
 0x2d1   : > { %v518_v25 = vpop.f32.mrb[0].mxu0 }
 0x2d2   : > { %v524_v26 = vmul.f32 %v522_v20, %v518_v25  ;;  %v744_v27 = vpop.f32.mrb[1].mxu0 }
 0x2d4   : > { %525 = vst.msk [vmem:[%s269_s14] sm:$0xff] %vm282_vm1, %v524_v26 }
 0x2d5   : > { %908 = shalt.err (!%p905_p12)
}
 0x2d6   : > { %s909_s25 = scalar_lea.hbm %s1210_s17, 128  ;;  %s913_s9 = scalar_lea.hbm %s1265_s5, 256 }
 0x2d7   : > { %p910_p1 = scmp.ne.s32.totalorder %s1210_s17, %s909_s25  ;;  %p914_p8 = scmp.lt.u32.totalorder %s1210_s17, %s1265_s5 }
 0x2d8   : > { %p915_p11 = scmp.lt.u32.totalorder %s913_s9, %s909_s25  ;;  %p917_p7 = scmp.lt.u32.totalorder %s909_s25, %s1210_s17 }
 0x2d9   : > { %p911_p2 = pnand %p910_p1, %p1274_p9 }
 0x2da   : > { %p916_p0 = por %p915_p11, %p914_p8 }
 0x2db   : > { %p912_p5 = pneg %p911_p2 }
 0x2dc   : > { %p918_p13 = por %p917_p7, %p916_p0 }
 0x2de   : > { %p919_p3 = pnand %p918_p13, %p912_p5 }
 0x2e0   : > { %922 = shalt.err (!%p919_p3)
}
 0x2e1   : > { %768 = dma.vmem_to_hbm [thread:$0]  (%p1274_p9), %s1212_s24, 128, %s1210_s17, %s532_s30  }
 0x2e2 PF: > { %s572_s14 = sand.u32 1, %s961_s18   ;;  %p1275_p6 = scmp.ne.s32.totalorder %s1270_s8, 0 }
 0x2e3   : > { %p1276_p4 = scmp.ge.s32.totalorder %s981_s23, 2  ;;  %s573_s28 = scalar_lea.sflag [#allocation4], %s572_s14 }
 0x2e5   : > { %p776_p10 = pnand %p1276_p4, %p1275_p6 }
 0x2e7   : > { %952 = dma.done.wait (!%p776_p10), %s573_s28, 128  }
 0x2e8   : > { %954 = vsyncadd (!%p776_p10), %s573_s28, 4294967168  ;;  %s582_s10 = scalar_lea.sflag [#allocation7], %s572_s14 }
 0x2e9   : > { %956 = dma.done.wait (!%p776_p10), %s582_s10, 128  }
 0x2ea   : > { %958 = vsyncadd (!%p776_p10), %s582_s10, 4294967168  ;;  %s25_s23 = sadd.s32 1, %s981_s23   ;;  %s1277_s18 = smov %s965_s19 }
 0x2eb   : > { %p22_p12 = scmp.ge.s32.totalorder %s25_s23, 4   ;;  %s1278_s19 = smov %s969_s20 }
 0x2ec   : > { %s1279_s20 = smov %s1075_s7  ;;  %s1280_s21 = smov %s977_s22 }
 0x2ed   : > { %s1281_s22 = smov %s1283_s26  ;;  %24 = sbr.rel (!%p22_p12) target bundleno = 8 (0x8), region = 98 }
 0x2f4   :  { %587 = vsyncpa [#allocation3], 1 }
 0x2f5   :  { %589 = vsyncpa [#allocation3 + $0x1], 1 }
 0x2f6   :  { %590 = vsyncpa [#allocation4], 1 }
 0x2f7   :  { %592 = vsyncpa [#allocation4 + $0x1], 1 }
 0x2f8   :  { %593 = vsyncpa [#allocation7], 1 }
 0x2f9   :  { %595 = vsyncpa [#allocation7 + $0x1], 1 }

</bundles_post_ra>
